<compile_context>
chip_gen: v7x
topology: tpu7x:2x2x1
jax: 0.10.0
libtpu: 0.0.40
codegen_flags: <defaults>
</compile_context>

<pallas_src>
import math

import jax
import jax.numpy as jnp
from jax.experimental import pallas as pl
from jax.experimental.pallas import tpu as pltpu


def _round_up(x, m):
    return ((x + m - 1) // m) * m


def _vmem_capacity_bytes():
    """Best-effort per-core VMEM capacity query (falls back to 128 MiB)."""
    try:
        info = pltpu.get_tpu_info()
        cap = int(getattr(info, "vmem_capacity_bytes", 0) or 0)
        if cap > 0:
            return cap
    except Exception:
        pass
    return 128 * 1024 * 1024


# ---------------------------------------------------------------------------
# Pallas kernel: bilinear combine (f32, channel-broadcast via 3-D view)
#                + grouped im2col matmul (MXU, f32 accumulate) + bias
# ---------------------------------------------------------------------------
def _make_dcn_kernel(groups, deformable_groups, c_out_pad, cpg, K, cog,
                     seg_info):
    DG = deformable_groups

    def kernel(v_ref, bw_ref, wt_ref, b_ref, o_ref):
        # v_ref  : (1, 4, C_in*K, TP)  bf16, rows ordered (dg, k, c)
        # bw_ref : (1, 4, DG*K,  TP)   bf16, rows ordered (dg, k)
        # wt_ref : (C_out_pad, Cg*K)   f32, cols permuted to (dg-seg, k, c)
        # b_ref  : (C_out_pad, 1)      f32
        # o_ref  : (1, C_out_pad, TP)  f32
        tp = o_ref.shape[2]

        # Elementwise hot path: combine the 4 bilinear corners in f32 on a
        # (K, cpg, TP) view so the per-(dg, k) weight broadcasts over the
        # channels of that deformable group with no explicit broadcast_to.
        accs = []
        for d in range(DG):
            acc = None
            for i in range(4):
                v = v_ref[0, i, d * K * cpg:(d + 1) * K * cpg, :]
                v3 = v.astype(jnp.float32).reshape(K, cpg, tp)
                bw = bw_ref[0, i, d * K:(d + 1) * K, :].astype(jnp.float32)
                term = v3 * bw[:, None, :]
                acc = term if acc is None else acc + term
            accs.append(acc)                                 # (K, cpg, TP) f32

        # Matmul hot path (MXU): per group, accumulate per-dg-segment dots and
        # write the group's output rows once.  The padded C_out rows are folded
        # into the last group (their weights and bias are zero) so no separate
        # masked zero store is needed.
        for g in range(groups):
            r_lo = g * cog
            r_hi = (g + 1) * cog if g < groups - 1 else c_out_pad
            out_g = None
            for (d, lo, hi, col_off) in seg_info[g]:
                seg_c = hi - lo
                seg = accs[d][:, lo:hi, :].reshape(K * seg_c, tp)  # (k, c) rows
                w_seg = wt_ref[r_lo:r_hi, col_off:col_off + K * seg_c]
                part = jnp.dot(w_seg, seg, preferred_element_type=jnp.float32)
                out_g = part if out_g is None else out_g + part
            o_ref[0, r_lo:r_hi, :] = (
                out_g + b_ref[r_lo:r_hi, :]).astype(o_ref.dtype)

    return kernel


# ---------------------------------------------------------------------------
# Glue (plain JAX): sampling coordinates, bilinear weights, neighbor gather.
# Returns V  : (N, 4, C_in*K, P)  neighbor values, rows ordered (dg, k, c)
#         BW : (N, 4, DG*K,  P)   bilinear weights,  rows ordered (dg, k)
# ---------------------------------------------------------------------------
def _deform_im2col_neighbors(x, offset, kernel_size, stride, padding, dilation,
                             deformable_groups):
    N, C_in, H, W = x.shape
    kH, kW = kernel_size
    sh, sw = stride
    ph, pw = padding
    dh, dw = dilation
    K = kH * kW
    DG = deformable_groups
    assert C_in % DG == 0, "in_channels must be divisible by deformable_groups"
    cpg = C_in // DG
    assert offset.shape[1] == 2 * DG * K

    Ho = (H + 2 * ph - (dh * (kH - 1) + 1)) // sh + 1
    Wo = (W + 2 * pw - (dw * (kW - 1) + 1)) // sw + 1
    P = Ho * Wo

    x = x.astype(jnp.float32)
    offset = offset.astype(jnp.float32)

    ho = jnp.arange(Ho, dtype=jnp.float32)
    wo = jnp.arange(Wo, dtype=jnp.float32)
    ii = jnp.repeat(jnp.arange(kH), kW).astype(jnp.float32)   # (K,)
    jj = jnp.tile(jnp.arange(kW), kH).astype(jnp.float32)     # (K,)

    base_y = ii[:, None, None] * dh + (ho[None, :, None] * sh - ph)   # (K,Ho,1)
    base_x = jj[:, None, None] * dw + (wo[None, None, :] * sw - pw)   # (K,1,Wo)

    # offset channel layout: per def. group, [dy_k, dx_k] interleaved over k
    off = offset.reshape(N, DG, K, 2, Ho, Wo)
    dy = off[:, :, :, 0]                                              # (N,DG,K,Ho,Wo)
    dx = off[:, :, :, 1]

    y = base_y + dy
    xs = base_x + dx

    valid = (y > -1.0) & (y < H) & (xs > -1.0) & (xs < W)
    vf = valid.astype(jnp.float32)

    y0f = jnp.floor(y)
    x0f = jnp.floor(xs)
    ly = y - y0f
    lx = xs - x0f
    hy = 1.0 - ly
    hx = 1.0 - lx

    y0 = y0f.astype(jnp.int32)
    x0 = x0f.astype(jnp.int32)
    y1 = y0 + 1
    x1 = x0 + 1

    m00 = ((y0 >= 0) & (x0 >= 0)).astype(jnp.float32)
    m01 = ((y0 >= 0) & (x1 <= W - 1)).astype(jnp.float32)
    m10 = ((y1 <= H - 1) & (x0 >= 0)).astype(jnp.float32)
    m11 = ((y1 <= H - 1) & (x1 <= W - 1)).astype(jnp.float32)

    w00 = hy * hx * m00 * vf
    w01 = hy * lx * m01 * vf
    w10 = ly * hx * m10 * vf
    w11 = ly * lx * m11 * vf

    y0c = jnp.clip(y0, 0, H - 1)
    y1c = jnp.clip(y1, 0, H - 1)
    x0c = jnp.clip(x0, 0, W - 1)
    x1c = jnp.clip(x1, 0, W - 1)

    x_g = x.reshape(N, DG, cpg, H * W)

    def gather(yi, xi):
        idx = (yi * W + xi).reshape(N, DG, 1, K * P)
        idx = jnp.broadcast_to(idx, (N, DG, cpg, K * P))
        v = jnp.take_along_axis(x_g, idx, axis=3)          # (N, DG, cpg, K*P)
        v = v.reshape(N, DG, cpg, K, P)
        v = v.transpose(0, 1, 3, 2, 4)                     # (N, DG, K, cpg, P)
        return v.reshape(N, C_in * K, P)                   # rows (dg, k, c)

    def flat_w(w):                       # (N, DG, K, Ho, Wo) -> (N, DG*K, P)
        return w.reshape(N, DG * K, P)

    V = jnp.stack([gather(y0c, x0c), gather(y0c, x1c),
                   gather(y1c, x0c), gather(y1c, x1c)], axis=1)   # (N,4,CK,P)
    BW = jnp.stack([flat_w(w00), flat_w(w01),
                    flat_w(w10), flat_w(w11)], axis=1)            # (N,4,DG*K,P)
    return V, BW, Ho, Wo


# ---------------------------------------------------------------------------
# Full forward (matches DeformConv.forward / DCN.deform_conv_forward semantics)
# ---------------------------------------------------------------------------
def deform_conv_forward(x, offset, weight, bias, stride, padding, dilation,
                        groups, deformable_groups):
    N, C_in, H, W = x.shape
    C_out, Cg, kH, kW = weight.shape
    assert Cg * groups == C_in, "in_channels must be divisible by groups"
    assert C_out % groups == 0, "out_channels must be divisible by groups"
    assert C_in % deformable_groups == 0, \
        "in_channels must be divisible by deformable_groups"
    K = kH * kW
    DG = deformable_groups
    cpg = C_in // DG
    cog = C_out // groups

    V, BW, Ho, Wo = _deform_im2col_neighbors(
        x, offset, (kH, kW), stride, padding, dilation, DG)
    P = Ho * Wo
    CK = C_in * K
    CKg = Cg * K
    DGK = DG * K

    # bf16 storage of the streamed slabs (combine / MXU accumulate stay f32)
    V = V.astype(jnp.bfloat16)
    BW = BW.astype(jnp.bfloat16)

    c_out_pad = _round_up(C_out, 8)

    # Static per-group decomposition into contiguous channel segments of whole
    # or partial deformable groups, plus the matching weight-column permutation
    # (rows of `cols` are ordered (dg, k, c), so weight columns must be too).
    segments = []
    for g in range(groups):
        ch_lo, ch_hi = g * Cg, (g + 1) * Cg
        segs = []
        for d in range(ch_lo // cpg, (ch_hi - 1) // cpg + 1):
            lo = max(ch_lo, d * cpg) - d * cpg
            hi = min(ch_hi, (d + 1) * cpg) - d * cpg
            segs.append((d, lo, hi))
        segments.append(segs)

    seg_info = []
    for g in range(groups):
        off = 0
        infos = []
        for (d, lo, hi) in segments[g]:
            infos.append((d, lo, hi, off))
            off += K * (hi - lo)
        seg_info.append(infos)

    w2d = weight.reshape(C_out, CKg).astype(jnp.float32)  # cols (c_in_group, k)
    w_rows = []
    for g in range(groups):
        perm = []
        for (d, lo, hi) in segments[g]:
            for k in range(K):
                for c in range(lo, hi):
                    c_in_group = d * cpg + c - g * Cg
                    perm.append(c_in_group * K + k)
        wg = jnp.take(w2d[g * cog:(g + 1) * cog, :],
                      jnp.asarray(perm, dtype=jnp.int32), axis=1)
        w_rows.append(wg)
    weight_mat = w_rows[0] if groups == 1 else jnp.concatenate(w_rows, axis=0)
    bias_col = bias.reshape(C_out, 1).astype(jnp.float32)
    if c_out_pad > C_out:
        weight_mat = jnp.pad(weight_mat, ((0, c_out_pad - C_out), (0, 0)))
        bias_col = jnp.pad(bias_col, ((0, c_out_pad - C_out), (0, 0)))

    # --- spatial tile selection: lane-dense, generation-aware VMEM budget ---
    vmem_cap = _vmem_capacity_bytes()
    if vmem_cap <= 64 * 1024 * 1024:          # v7x-class (64 MiB per TC)
        tile_budget = 20 * 1024 * 1024
        vmem_limit = 40 * 1024 * 1024
        tp_max = 512
    else:                                     # v5e / v6e (128 MiB)
        tile_budget = 40 * 1024 * 1024
        vmem_limit = 80 * 1024 * 1024
        tp_max = 1024

    P128 = _round_up(P, 128)
    TP = min(tp_max, P128)
    while TP > 128:
        # double-buffered bf16 V + BW tiles, f32 output tile, + f32 combine acc
        tile_bytes = (2 * (2 * 4 * CK * TP + 2 * 4 * DGK * TP
                           + 4 * c_out_pad * TP)
                      + 4 * CK * TP)
        if tile_bytes <= tile_budget:
            break
        TP -= 128
    P_pad = _round_up(P, TP)

    if P_pad > P:
        V = jnp.pad(V, ((0, 0), (0, 0), (0, 0), (0, P_pad - P)))
        BW = jnp.pad(BW, ((0, 0), (0, 0), (0, 0), (0, P_pad - P)))
    # NOTE: padded P columns of the kernel output hold `bias` (cols are zero
    # there); they are sliced off below — never reduce over P_pad directly.

    kernel = _make_dcn_kernel(groups, DG, c_out_pad, cpg, K, cog, seg_info)

    out_flat = pl.pallas_call(
        kernel,
        out_shape=jax.ShapeDtypeStruct((N, c_out_pad, P_pad), jnp.float32),
        grid_spec=pltpu.PrefetchScalarGridSpec(
            num_scalar_prefetch=0,
            grid=(N, P_pad // TP),
            in_specs=[
                pl.BlockSpec((1, 4, CK, TP), lambda n, p: (n, 0, 0, p)),   # V
                pl.BlockSpec((1, 4, DGK, TP), lambda n, p: (n, 0, 0, p)),  # BW
                pl.BlockSpec((c_out_pad, CKg), lambda n, p: (0, 0)),       # W
                pl.BlockSpec((c_out_pad, 1), lambda n, p: (0, 0)),         # b
            ],
            out_specs=pl.BlockSpec((1, c_out_pad, TP), lambda n, p: (n, 0, p)),
        ),
        compiler_params=pltpu.CompilerParams(
            dimension_semantics=("parallel", "parallel"),
            vmem_limit_bytes=vmem_limit),
    )(V, BW, weight_mat, bias_col)

    return out_flat[:, :C_out, :P].reshape(N, C_out, Ho, Wo)


# pure-JAX reference using the same neighbor slabs and the same bf16
# quantization of V / BW, so it checks the kernel math bit-for-bit (modulo
# matmul accumulation order).
def deform_conv_reference(x, offset, weight, bias, stride, padding, dilation,
                          groups, deformable_groups):
    N, C_in, H, W = x.shape
    C_out, Cg, kH, kW = weight.shape
    K = kH * kW
    DG = deformable_groups
    cpg = C_in // DG
    cog = C_out // groups
    V, BW, Ho, Wo = _deform_im2col_neighbors(
        x, offset, (kH, kW), stride, padding, dilation, DG)
    P = Ho * Wo
    Vq = V.astype(jnp.bfloat16).astype(jnp.float32)
    BWq = BW.astype(jnp.bfloat16).astype(jnp.float32)
    bw_full = jnp.broadcast_to(BWq.reshape(N, 4, DG, K, 1, P),
                               (N, 4, DG, K, cpg, P)).reshape(N, 4, C_in * K, P)
    cols = jnp.sum(Vq * bw_full, axis=1)                     # rows (dg, k, c)
    cols = cols.reshape(N, DG, K, cpg, P).transpose(0, 1, 3, 2, 4)
    cols = cols.reshape(N, groups, Cg, K, P)                 # (N,g,c_in_g,k,P)
    wm = weight.reshape(groups, cog, Cg, K).astype(jnp.float32)
    out = jnp.einsum('gocq,ngcqp->ngop', wm, cols,
                     precision=jax.lax.Precision.HIGHEST)
    out = out.reshape(N, C_out, P) + bias.astype(jnp.float32)[None, :, None]
    return out.reshape(N, C_out, Ho, Wo)


if __name__ == "__main__":
    # DeformConv(in_channels=4, out_channels=8, kernel_size=3, stride=1,
    #            padding=1, dilation=1, groups=1, deformable_groups=1, bias=True)
    N, C_in, H, W = 2, 4, 16, 16
    C_out, kH, kW = 8, 3, 3
    stride, padding, dilation = (1, 1), (1, 1), (1, 1)
    groups, deformable_groups = 1, 1

    Ho = (H + 2 * padding[0] - (dilation[0] * (kH - 1) + 1)) // stride[0] + 1
    Wo = (W + 2 * padding[1] - (dilation[1] * (kW - 1) + 1)) // stride[1] + 1

    key = jax.random.PRNGKey(0)
    k1, k2, k3, k4 = jax.random.split(key, 4)

    x = jax.random.normal(k1, (N, C_in, H, W), jnp.float32)
    offset = 2.0 * jax.random.normal(
        k2, (N, 2 * deformable_groups * kH * kW, Ho, Wo), jnp.float32)

    # deterministic kaiming_uniform(a=sqrt(5)) equivalent: U(-1/sqrt(fan_in), .)
    fan_in = (C_in // groups) * kH * kW
    bound = 1.0 / math.sqrt(fan_in)
    weight = jax.random.uniform(k3, (C_out, C_in // groups, kH, kW),
                                jnp.float32, -bound, bound)
    bias = jax.random.uniform(k4, (C_out,), jnp.float32, -bound, bound)

    out = deform_conv_forward(x, offset, weight, bias, stride, padding,
                              dilation, groups, deformable_groups)
    jax.block_until_ready(out)

    ref = deform_conv_reference(x, offset, weight, bias, stride, padding,
                                dilation, groups, deformable_groups)
    assert out.shape == (N, C_out, Ho, Wo), out.shape
    assert jnp.allclose(out, ref, rtol=1e-2, atol=1e-2), \
        float(jnp.max(jnp.abs(out - ref)))

    print("KERNEL_OK")
</pallas_src>

<mosaic_0001>
module attributes {stable_mosaic.version = 11 : i64} {
  func.func @kernel(%arg0: i32, %arg1: i32, %arg2: memref<1x4x36x256xbf16, #tpu.memory_space<vmem>>, %arg3: memref<1x4x9x256xbf16, #tpu.memory_space<vmem>>, %arg4: memref<8x36xf32, #tpu.memory_space<vmem>>, %arg5: memref<8x1xf32, #tpu.memory_space<vmem>>, %arg6: memref<1x8x256xf32, #tpu.memory_space<vmem>>) attributes {dimension_semantics = [#tpu.dimension_semantics<parallel>, #tpu.dimension_semantics<parallel>], iteration_bounds = array<i64: 2, 1>, scalar_prefetch = 0 : i64, scratch_operands = 0 : i64, tpu.core_type = #tpu.core_type<tc>, window_params = [{transform_indices = @transform_0, window_bounds = array<i64: 1, 4, 36, 256>}, {transform_indices = @transform_1, window_bounds = array<i64: 1, 4, 9, 256>}, {pipeline_mode = #tpu.pipeline_mode<synchronous>, transform_indices = @transform_2, window_bounds = array<i64: 8, 36>}, {pipeline_mode = #tpu.pipeline_mode<synchronous>, transform_indices = @transform_3, window_bounds = array<i64: 8, 1>}, {transform_indices = @transform_4, window_bounds = array<i64: 1, 8, 256>}]} {
    %c0 = arith.constant 0 : index
    %c0_0 = arith.constant 0 : index
    %c0_1 = arith.constant 0 : index
    %c0_2 = arith.constant 0 : index
    %0 = vector.load %arg2[%c0, %c0_0, %c0_1, %c0_2] : memref<1x4x36x256xbf16, #tpu.memory_space<vmem>>, vector<1x1x36x256xbf16>
    %1 = vector.shape_cast %0 : vector<1x1x36x256xbf16> to vector<36x256xbf16>
    %2 = arith.extf %1 : vector<36x256xbf16> to vector<36x256xf32>
    %3 = vector.shape_cast %2 : vector<36x256xf32> to vector<9x4x256xf32>
    %c0_3 = arith.constant 0 : index
    %c0_4 = arith.constant 0 : index
    %c0_5 = arith.constant 0 : index
    %c0_6 = arith.constant 0 : index
    %4 = vector.load %arg3[%c0_3, %c0_4, %c0_5, %c0_6] : memref<1x4x9x256xbf16, #tpu.memory_space<vmem>>, vector<1x1x9x256xbf16>
    %5 = vector.shape_cast %4 : vector<1x1x9x256xbf16> to vector<9x256xbf16>
    %6 = arith.extf %5 : vector<9x256xbf16> to vector<9x256xf32>
    %7 = vector.shape_cast %6 : vector<9x256xf32> to vector<9x1x256xf32>
    %8 = vector.broadcast %7 : vector<9x1x256xf32> to vector<9x4x256xf32>
    %9 = arith.mulf %3, %8 : vector<9x4x256xf32>
    %c0_7 = arith.constant 0 : index
    %c1 = arith.constant 1 : index
    %c0_8 = arith.constant 0 : index
    %c0_9 = arith.constant 0 : index
    %10 = vector.load %arg2[%c0_7, %c1, %c0_8, %c0_9] : memref<1x4x36x256xbf16, #tpu.memory_space<vmem>>, vector<1x1x36x256xbf16>
    %11 = vector.shape_cast %10 : vector<1x1x36x256xbf16> to vector<36x256xbf16>
    %12 = arith.extf %11 : vector<36x256xbf16> to vector<36x256xf32>
    %13 = vector.shape_cast %12 : vector<36x256xf32> to vector<9x4x256xf32>
    %c0_10 = arith.constant 0 : index
    %c1_11 = arith.constant 1 : index
    %c0_12 = arith.constant 0 : index
    %c0_13 = arith.constant 0 : index
    %14 = vector.load %arg3[%c0_10, %c1_11, %c0_12, %c0_13] : memref<1x4x9x256xbf16, #tpu.memory_space<vmem>>, vector<1x1x9x256xbf16>
    %15 = vector.shape_cast %14 : vector<1x1x9x256xbf16> to vector<9x256xbf16>
    %16 = arith.extf %15 : vector<9x256xbf16> to vector<9x256xf32>
    %17 = vector.shape_cast %16 : vector<9x256xf32> to vector<9x1x256xf32>
    %18 = vector.broadcast %17 : vector<9x1x256xf32> to vector<9x4x256xf32>
    %19 = arith.mulf %13, %18 : vector<9x4x256xf32>
    %20 = arith.addf %9, %19 : vector<9x4x256xf32>
    %c0_14 = arith.constant 0 : index
    %c2 = arith.constant 2 : index
    %c0_15 = arith.constant 0 : index
    %c0_16 = arith.constant 0 : index
    %21 = vector.load %arg2[%c0_14, %c2, %c0_15, %c0_16] : memref<1x4x36x256xbf16, #tpu.memory_space<vmem>>, vector<1x1x36x256xbf16>
    %22 = vector.shape_cast %21 : vector<1x1x36x256xbf16> to vector<36x256xbf16>
    %23 = arith.extf %22 : vector<36x256xbf16> to vector<36x256xf32>
    %24 = vector.shape_cast %23 : vector<36x256xf32> to vector<9x4x256xf32>
    %c0_17 = arith.constant 0 : index
    %c2_18 = arith.constant 2 : index
    %c0_19 = arith.constant 0 : index
    %c0_20 = arith.constant 0 : index
    %25 = vector.load %arg3[%c0_17, %c2_18, %c0_19, %c0_20] : memref<1x4x9x256xbf16, #tpu.memory_space<vmem>>, vector<1x1x9x256xbf16>
    %26 = vector.shape_cast %25 : vector<1x1x9x256xbf16> to vector<9x256xbf16>
    %27 = arith.extf %26 : vector<9x256xbf16> to vector<9x256xf32>
    %28 = vector.shape_cast %27 : vector<9x256xf32> to vector<9x1x256xf32>
    %29 = vector.broadcast %28 : vector<9x1x256xf32> to vector<9x4x256xf32>
    %30 = arith.mulf %24, %29 : vector<9x4x256xf32>
    %31 = arith.addf %20, %30 : vector<9x4x256xf32>
    %c0_21 = arith.constant 0 : index
    %c3 = arith.constant 3 : index
    %c0_22 = arith.constant 0 : index
    %c0_23 = arith.constant 0 : index
    %32 = vector.load %arg2[%c0_21, %c3, %c0_22, %c0_23] : memref<1x4x36x256xbf16, #tpu.memory_space<vmem>>, vector<1x1x36x256xbf16>
    %33 = vector.shape_cast %32 : vector<1x1x36x256xbf16> to vector<36x256xbf16>
    %34 = arith.extf %33 : vector<36x256xbf16> to vector<36x256xf32>
    %35 = vector.shape_cast %34 : vector<36x256xf32> to vector<9x4x256xf32>
    %c0_24 = arith.constant 0 : index
    %c3_25 = arith.constant 3 : index
    %c0_26 = arith.constant 0 : index
    %c0_27 = arith.constant 0 : index
    %36 = vector.load %arg3[%c0_24, %c3_25, %c0_26, %c0_27] : memref<1x4x9x256xbf16, #tpu.memory_space<vmem>>, vector<1x1x9x256xbf16>
    %37 = vector.shape_cast %36 : vector<1x1x9x256xbf16> to vector<9x256xbf16>
    %38 = arith.extf %37 : vector<9x256xbf16> to vector<9x256xf32>
    %39 = vector.shape_cast %38 : vector<9x256xf32> to vector<9x1x256xf32>
    %40 = vector.broadcast %39 : vector<9x1x256xf32> to vector<9x4x256xf32>
    %41 = arith.mulf %35, %40 : vector<9x4x256xf32>
    %42 = arith.addf %31, %41 : vector<9x4x256xf32>
    %43 = vector.shape_cast %42 : vector<9x4x256xf32> to vector<36x256xf32>
    %c0_28 = arith.constant 0 : index
    %c0_29 = arith.constant 0 : index
    %44 = vector.load %arg4[%c0_28, %c0_29] : memref<8x36xf32, #tpu.memory_space<vmem>>, vector<8x36xf32>
    %cst = arith.constant dense<0.000000e+00> : vector<8x256xf32>
    %45 = tpu.matmul %44, %43, %cst {dimension_numbers = #tpu.dot_dimension_numbers<[1], [0], [0], [1], [0, 0, 1, 1], [], []>} : vector<8x36xf32>, vector<36x256xf32>, vector<8x256xf32> -> vector<8x256xf32>
    %c0_30 = arith.constant 0 : index
    %c0_31 = arith.constant 0 : index
    %46 = vector.load %arg5[%c0_30, %c0_31] : memref<8x1xf32, #tpu.memory_space<vmem>>, vector<8x1xf32>
    %47 = vector.broadcast %46 : vector<8x1xf32> to vector<8x256xf32>
    %48 = arith.addf %45, %47 : vector<8x256xf32>
    %c0_32 = arith.constant 0 : index
    %c0_33 = arith.constant 0 : index
    %c0_34 = arith.constant 0 : index
    %49 = vector.load %arg6[%c0_32, %c0_33, %c0_34] : memref<1x8x256xf32, #tpu.memory_space<vmem>>, vector<1x8x256xf32>
    %50 = vector.shape_cast %49 : vector<1x8x256xf32> to vector<8x256xf32>
    %51 = vector.shape_cast %48 : vector<8x256xf32> to vector<1x8x256xf32>
    tpu.vector_store %arg6[%c0_32, %c0_33, %c0_34], %51 {strides = array<i32>} : memref<1x8x256xf32, #tpu.memory_space<vmem>>, vector<1x8x256xf32>,
    return
  }
  func.func @transform_0(%arg0: i32, %arg1: i32) -> (i32, i32, i32, i32) {
    %c0_i32 = arith.constant 0 : i32
    %c0_i32_0 = arith.constant 0 : i32
    %c0_i32_1 = arith.constant 0 : i32
    return %arg0, %c0_i32, %c0_i32_0, %arg1 : i32, i32, i32, i32
  }
  func.func @transform_1(%arg0: i32, %arg1: i32) -> (i32, i32, i32, i32) {
    %c0_i32 = arith.constant 0 : i32
    %c0_i32_0 = arith.constant 0 : i32
    %c0_i32_1 = arith.constant 0 : i32
    return %arg0, %c0_i32, %c0_i32_0, %arg1 : i32, i32, i32, i32
  }
  func.func @transform_2(%arg0: i32, %arg1: i32) -> (i32, i32) {
    %c0_i32 = arith.constant 0 : i32
    %c0_i32_0 = arith.constant 0 : i32
    %c0_i32_1 = arith.constant 0 : i32
    return %c0_i32, %c0_i32_0 : i32, i32
  }
  func.func @transform_3(%arg0: i32, %arg1: i32) -> (i32, i32) {
    %c0_i32 = arith.constant 0 : i32
    %c0_i32_0 = arith.constant 0 : i32
    %c0_i32_1 = arith.constant 0 : i32
    return %c0_i32, %c0_i32_0 : i32, i32
  }
  func.func @transform_4(%arg0: i32, %arg1: i32) -> (i32, i32, i32) {
    %c0_i32 = arith.constant 0 : i32
    %c0_i32_0 = arith.constant 0 : i32
    return %arg0, %c0_i32, %arg1 : i32, i32, i32
  }
}

</mosaic_0001>

<bundles_post_ra>
// kernel: tpu_custom_call.1
= control target key start
LH: loop header
LB: loop body
LE: loop exit
PB: predicated region body
PF: predicated region fallthrough
CT: control target
= control target key end

     0   :  { %s2392_s0 = inlined_call_operand.hbm [shape: bf16[2,4,36,256], index: 0, kind: input, shape index: {}]   ;;  %s2393_s1 = inlined_call_operand.hbm [shape: bf16[2,4,9,256], index: 1, kind: input, shape index: {}]   ;;  %s2394_s2 = inlined_call_operand.hbm [shape: f32[8,36], index: 2, kind: input, shape index: {}]   ;;  %s2395_s3 = inlined_call_operand.hbm [shape: f32[8,1], index: 3, kind: input, shape index: {}]   ;;  %s2396_s4 = inlined_call_operand.hbm [shape: f32[2,8,256], index: 4, kind: output, shape index: {}]  }
   0x1   :  { %2403 = sst [smem:[#allocation17_spill]] %s2392_s0 }
   0x2   :  { %2404 = sst [smem:[#allocation18_spill]] %s2394_s2 }
   0x3   :  { %2405 = sst [smem:[#allocation19_spill]] %s2395_s3 }
   0x4   :  { %9 = vsyncpa [#allocation3], 0 }
   0x5   :  { %11 = vsyncpa [#allocation3 + $0x1], 0 }
   0x6   :  { %12 = vsyncpa [#allocation6], 0 }
   0x7   :  { %14 = vsyncpa [#allocation6 + $0x1], 0 }
   0x8   :  { %15 = vsyncpa [#allocation9], 0 }
   0x9   :  { %16 = vsyncpa [#allocation4], 0 }
   0xa   :  { %18 = vsyncpa [#allocation4 + $0x1], 0  ;;  %s1866_s15 = smov 0   ;;  %s1868_s16 = smov 0  }
   0xb   :  { %s1870_s17 = smov 0   ;;  %s1872_s18 = smov 0  }
   0xc   :  { %s1874_s19 = smov 0   ;;  %s1876_s20 = smov 0  }
   0xd LB: > { %s1897_s21 = sadd.s32 4294967295, %s1829_s20   ;;  %s1469_s22 = sadd.s32 4294967294, %s1829_s20   ;;  %s1829_s20 = sphi %s1876_s20, %s24_s20   ;;  %s1825_s19 = sphi %s1874_s19, %s2432_s19   ;;  %s1821_s18 = sphi %s1872_s18, %s2431_s18   ;;  %s1817_s17 = sphi %s1870_s17, %s2430_s17   ;;  %s1813_s16 = sphi %s1868_s16, %s2429_s16   ;;  %s1809_s15 = sphi %s1866_s15, %s2428_s15  }
   0xe   : > { %s45_s23 = sadd.s32 1, %s1817_s17  ;;  %p52_p0 = scmp.ne.s32.totalorder %s1817_s17, %s1813_s16 }
   0xf   : > { %p53_p1 = scmp.eq.s32.totalorder %s1829_s20, 0  ;;  %p58_p2 = scmp.ne.s32.totalorder %s1813_s16, %s1809_s15 }
  0x10   : > { %p2397_p3 = scmp.eq.s32.totalorder %s1897_s21, 0  ;;  %p154_p4 = scmp.eq.s32.totalorder %s1897_s21, 1 }
  0x11   : > { %p1908_p5 = por %p53_p1, %p52_p0  ;;  %p160_p6 = scmp.eq.s32.totalorder %s1469_s22, 1 }
  0x12   : > { %p1914_p7 = por %p2397_p3, %p58_p2  ;;  %p1918_p8 = por %p154_p4, %p52_p0 }
  0x13   : > { %p1922_p9 = por %p160_p6, %p58_p2  ;;  %p1470_p10 = scmp.ge.s32.totalorder %s1829_s20, 1 }
  0x14   : > { %s2407_s25 = scalar_select %p1914_p7, 1, 0 }
  0x15   : > { %s2408_s26 = scalar_select %p1918_p8, 1, 0 }
  0x16   : > { %s2409_s27 = scalar_select %p1922_p9, 1, 0 }
  0x17   : > { %p167_p11 = scmp.lt.s32.totalorder %s1829_s20, 3  ;;  %s1831_s29 = smov [#allocation7]  }
  0x18   : > { %s180_s30 = sshll.u32 %s1831_s29, 4  ;;  %p1559_p1 = scmp.lt.s32.totalorder %s1829_s20, 2  ;;  %s181_s30 = int_to_ptr.vmem [resolvable:$true] %s180_s30 }
  0x19   : > { %p1929_p13 = pnand %p1470_p10, %p167_p11  ;;  %s1832_s6 = smov [#allocation8]  }
  0x1a   : > { %p1938_p4 = pnand %p1559_p1, %p1908_p5  ;;  %s191_s7 = sshll.u32 %s1832_s6, 4  ;;  %s1948_s7 = int_to_ptr.vmem [resolvable:$true] %s191_s7 }
  0x1b   : > { %s2410_s28 = scalar_select %p1929_p13, 1, 0 }
  0x1c   : > { %p1539_p0 = pneg %p1929_p13  ;;  %s2413_s2 = sld [smem:[#allocation18_spill]] }
  0x1d   : > { %s2411_s5 = scalar_select %p1938_p4, 1, 0 }
  0x1e   : > { %p1944_p2 = pnand %p1539_p0, %p2397_p3 }
  0x20   : > { %p1621_p6 = pneg %p1944_p2 }
  0x22   : > { %s1619_s11 = scalar_lea.hbm %s2413_s2, 128 }
  0x23   : > { %p1620_p5 = scmp.ne.s32.totalorder %s2413_s2, %s1619_s11  ;;  %p1626_p1 = scmp.lt.u32.totalorder %s1619_s11, %s2413_s2 }
  0x25   : > { %p1622_p10 = pnand %p1621_p6, %p1620_p5 }
  0x27   : > { %p1623_p11 = pneg %p1622_p10 }
  0x29   : > { %p1628_p0 = pnand %p1626_p1, %p1623_p11 }
  0x2b   : > { %1631 = shalt.err (!%p1628_p0)
}
  0x2c   : > { %s1632_s24 = scalar_lea.vmem %s181_s30, 128  ;;  %p1640_p8 = scmp.lt.s32.totalorder %s181_s30, %s181_s30 }
  0x2d   : > { %p1633_p12 = scmp.ne.s32.totalorder %s181_s30, %s1632_s24  ;;  %p1641_p7 = scmp.lt.s32.totalorder %s1632_s24, %s1632_s24 }
  0x2f   : > { %p1635_p3 = pnand %p1633_p12, %p1621_p6  ;;  %p1642_p13 = por %p1641_p7, %p1640_p8 }
  0x31   : > { %p1636_p9 = pneg %p1635_p3 }
  0x33   : > { %p1643_p4 = pnand %p1642_p13, %p1636_p9 }
  0x35   : > { %1646 = shalt.err (!%p1643_p4)
}
  0x36   : > { %1542 = dma.hbm_to_vmem [thread:$0]  (!%p1944_p2), %s2413_s2, 128, %s181_s30, [#allocation6]  }
  0x37   : > { %s2414_s3 = sld [smem:[#allocation19_spill]] }
  0x3d   : > { %s1647_s11 = scalar_lea.hbm %s2414_s3, 128 }
  0x3e   : > { %p1648_p3 = scmp.ne.s32.totalorder %s2414_s3, %s1647_s11  ;;  %p1654_p9 = scmp.lt.u32.totalorder %s1647_s11, %s2414_s3 }
  0x40   : > { %p1650_p7 = pnand %p1648_p3, %p1621_p6 }
  0x42   : > { %p1651_p8 = pneg %p1650_p7 }
  0x44   : > { %p1656_p12 = pnand %p1654_p9, %p1651_p8 }
  0x46   : > { %1659 = shalt.err (!%p1656_p12)
}
  0x47   : > { %s1660_s30 = scalar_lea.vmem %s1948_s7, 128  ;;  %p1668_p10 = scmp.lt.s32.totalorder %s1948_s7, %s1948_s7 }
  0x48   : > { %p1661_p13 = scmp.ne.s32.totalorder %s1948_s7, %s1660_s30  ;;  %p1669_p11 = scmp.lt.s32.totalorder %s1660_s30, %s1660_s30 }
  0x4a   : > { %p1663_p4 = pnand %p1661_p13, %p1621_p6  ;;  %p1670_p1 = por %p1669_p11, %p1668_p10 }
  0x4c   : > { %p1664_p5 = pneg %p1663_p4 }
  0x4e   : > { %p1671_p0 = pnand %p1670_p1, %p1664_p5 }
  0x50   : > { %1674 = shalt.err (!%p1671_p0)
}
  0x51   : > { %1545 = dma.hbm_to_vmem [thread:$0]  (!%p1944_p2), %s2414_s3, 128, %s1948_s7, [#allocation9]  }
  0x52   : > { %s36_s6 = sadd.s32 1, %s1825_s19  ;;  %s1999_s9 = sand.u32 1, %s1817_s17  }
  0x53   : > { %p38_p6 = scmp.ge.s32.totalorder %s36_s6, 2  ;;  %s1522_s8 = smul.u32 160, %s1999_s9 }
  0x54   : > { %s1523_s10 = smul.u32 2560, %s1825_s19  ;;  %s2416_s0 = sld [smem:[#allocation17_spill]] }
  0x55   : > { %s2434_s6 = smov (%p38_p6, %s36_s6), 0  ;;  %s206_s12 = scalar_lea.vmem [#allocation2], %s1522_s8 }
  0x56   : > { %2415 = sst [smem:[#allocation16_spill]] %s2434_s6  ;;  %s40_s11 = ssub.s32 %s1825_s19, %s2434_s6 }
  0x57   : > { %s215_s13 = sshll.u32 %s206_s12, 4  ;;  %p43_p3 = scmp.eq.s32.totalorder %s40_s11, 0  ;;  %s2012_s13 = int_to_ptr.vmem [resolvable:$true] %s215_s13 }
  0x58   : > { %s203_s24 = scalar_lea.sflag [#allocation3], %s1999_s9  ;;  %p2417_p7 = scmp.ne.s32.totalorder %s2411_s5, 0 }
  0x59   : > { %s2017_s30 = scalar_select %p43_p3, %s1817_s17, %s45_s23  }
  0x5a   : > { %s2010_s7 = scalar_lea.hbm %s2416_s0, %s1523_s10  ;;  %p1677_p8 = pneg %p2417_p7 }
  0x5b   : > { %s1675_s29 = scalar_lea.hbm %s2010_s7, 2560  ;;  %s1680_s11 = scalar_lea.hbm %s2416_s0, 5120 }
  0x5c   : > { %p1676_p2 = scmp.ne.s32.totalorder %s2010_s7, %s1675_s29  ;;  %p1681_p13 = scmp.lt.u32.totalorder %s2010_s7, %s2416_s0 }
  0x5d   : > { %p1682_p4 = scmp.lt.u32.totalorder %s1680_s11, %s1675_s29  ;;  %p1684_p10 = scmp.lt.u32.totalorder %s1675_s29, %s2010_s7 }
  0x5e   : > { %p1678_p9 = pnand %p1677_p8, %p1676_p2 }
  0x5f   : > { %p1683_p5 = por %p1682_p4, %p1681_p13 }
  0x60   : > { %p1679_p12 = pneg %p1678_p9 }
  0x61   : > { %p1685_p11 = por %p1684_p10, %p1683_p5 }
  0x63   : > { %p1686_p1 = pnand %p1685_p11, %p1679_p12 }
  0x65   : > { %1689 = shalt.err (!%p1686_p1)
}
  0x66   : > { %s1690_s23 = scalar_lea.vmem %s2012_s13, 2560  ;;  %s1833_s22 = smov [#allocation2]  }
  0x67   : > { %p1691_p0 = scmp.ne.s32.totalorder %s2012_s13, %s1690_s23  ;;  %s1695_s8 = sshll.u32 %s1833_s22, 4  ;;  %s1696_s8 = int_to_ptr.vmem [resolvable:$false] %s1695_s8 }
  0x68   : > { %s1697_s10 = scalar_lea.vmem %s1696_s8, 5120  ;;  %p1698_p2 = scmp.lt.s32.totalorder %s2012_s13, %s1696_s8 }
  0x69   : > { %p1693_p6 = pnand %p1691_p0, %p1677_p8  ;;  %p1699_p9 = scmp.lt.s32.totalorder %s1697_s10, %s1690_s23 }
  0x6b   : > { %p1694_p3 = pneg %p1693_p6  ;;  %p1700_p13 = por %p1699_p9, %p1698_p2 }
  0x6d   : > { %p1701_p4 = pnand %p1700_p13, %p1694_p3 }
  0x6f   : > { %1704 = shalt.err (!%p1701_p4)
}
  0x70   : > { %s1834_s29 = smov 128   ;;  %s1835_s11 = smov 8  }
  0x71   : > { %1549 = dma.hbm_to_vmem [thread:$0]  (!%p2417_p7), %s2010_s7, 2560, %s2012_s13, %s203_s24, %s1834_s29, %s1834_s29, %s1835_s11  }
  0x72   : > { %s225_s12 = sand.u32 1, %s1829_s20   ;;  %s1475_s14 = sshll.u32 %s1999_s9, 6 }
  0x73   : > { %s1512_s23 = sshll.u32 %s1825_s19, 10  ;;  %s229_s22 = scalar_lea.vmem [#allocation5], %s1475_s14 }
  0x74   : > { %s238_s8 = sshll.u32 %s229_s22, 4  ;;  %s2056_s2 = scalar_lea.hbm %s2393_s1, %s1512_s23  ;;  %s2058_s8 = int_to_ptr.vmem [resolvable:$true] %s238_s8 }
  0x75   : > { %s2060_s3 = scalar_lea.sflag [#allocation6], %s225_s12  ;;  %s1705_s6 = scalar_lea.hbm %s2056_s2, 1024 }
  0x76   : > { %p1706_p12 = scmp.ne.s32.totalorder %s2056_s2, %s1705_s6  ;;  %s1710_s0 = scalar_lea.hbm %s2393_s1, 2048 }
  0x77   : > { %p1711_p11 = scmp.lt.u32.totalorder %s2056_s2, %s2393_s1  ;;  %p1712_p1 = scmp.lt.u32.totalorder %s1710_s0, %s1705_s6 }
  0x78   : > { %p1708_p5 = pnand %p1706_p12, %p1677_p8  ;;  %p1714_p6 = scmp.lt.u32.totalorder %s1705_s6, %s2056_s2 }
  0x79   : > { %p1713_p0 = por %p1712_p1, %p1711_p11 }
  0x7a   : > { %p1709_p10 = pneg %p1708_p5 }
  0x7b   : > { %p1715_p3 = por %p1714_p6, %p1713_p0 }
  0x7d   : > { %p1716_p2 = pnand %p1715_p3, %p1709_p10 }
  0x7f   : > { %1719 = shalt.err (!%p1716_p2)
}
  0x80   : > { %s1720_s12 = scalar_lea.vmem %s2058_s8, 1024  ;;  %s1836_s14 = smov [#allocation5]  }
  0x81   : > { %p1721_p9 = scmp.ne.s32.totalorder %s2058_s8, %s1720_s12  ;;  %s1725_s23 = sshll.u32 %s1836_s14, 4  ;;  %s1726_s23 = int_to_ptr.vmem [resolvable:$false] %s1725_s23 }
  0x82   : > { %s1727_s22 = scalar_lea.vmem %s1726_s23, 2048  ;;  %p1728_p12 = scmp.lt.s32.totalorder %s2058_s8, %s1726_s23 }
  0x83   : > { %p1723_p13 = pnand %p1721_p9, %p1677_p8  ;;  %p1729_p5 = scmp.lt.s32.totalorder %s1727_s22, %s1720_s12 }
  0x85   : > { %p1724_p4 = pneg %p1723_p13  ;;  %p1730_p11 = por %p1729_p5, %p1728_p12 }
  0x87   : > { %p1731_p1 = pnand %p1730_p11, %p1724_p4 }
  0x89   : > { %1734 = shalt.err (!%p1731_p1)
}
  0x8a   : > { %1552 = dma.hbm_to_vmem [thread:$0]  (!%p2417_p7), %s2056_s2, 1024, %s2058_s8, %s2060_s3, %s1834_s29, %s1834_s29, %s1835_s11  }
  0x8b   : > { %p2418_p8 = scmp.ne.s32.totalorder %s2410_s28, 0 }
  0x8c   : > { %s2092_s6 = sand.u32 (!%p2418_p8), 1, %s1813_s16   ;;  %p2419_p10 = scmp.ne.s32.totalorder (!%p2418_p8), %s2407_s25, 0 }
  0x8d   : > { %250 = sbr.rel (%p2418_p8) target bundleno = 489 (0x1e9), region = 36  ;;  %s253_s9 = scalar_lea.sflag (!%p2418_p8), [#allocation3], %s2092_s6 }
  0x8e   : > { %s1524_s10 = smul.u32 (!%p2418_p8), 160, %s2092_s6 }
  0x90   : > { %s2096_s13 = scalar_lea.vmem (!%p2418_p8), [#allocation2], %s1524_s10 }
  0x94   : > { %1788 = dma.done.wait (%p2419_p10), %s253_s9, 2560  }
  0x95   : > { %1790 = vsyncadd (%p2419_p10), %s253_s9, 4294964736  ;;  %s261_s2 = sand.u32 1, %s1897_s21   ;;  %s1479_s3 = sshll.u32 %s2092_s6, 6 }
  0x96   : > { %s262_s28 = scalar_lea.sflag [#allocation6], %s261_s2  ;;  %s2104_s5 = scalar_lea.vmem [#allocation5], %s1479_s3 }
  0x97   : > { %1792 = dma.done.wait (%p2419_p10), %s262_s28, 1024  }
  0x98   : > { %1794 = vsyncadd (%p2419_p10), %s262_s28, 4294966272  ;;  %p2420_p7 = scmp.eq.s32.totalorder %s1897_s21, 0 }
  0x9a   : > { %1796 = dma.done.wait (%p2420_p7), [#allocation6], 128   ;;  %p2421_p0 = pmov %p2420_p7 }
  0x9c   : > { %1798 = vsyncadd (%p2421_p0), [#allocation6], 4294967168  ;;  %p2422_p6 = pmov %p2421_p0 }
  0x9d   : > { %p2423_p3 = pmov %p2421_p0 }
  0x9e   : > { %1800 = dma.done.wait (%p2422_p6), [#allocation9], 128  }
  0x9f   : > { %1802 = vsyncadd (%p2423_p3), [#allocation9], 4294967168  ;;  %v1837_v0 = vmov 1966171168   ;;  %v364_v2 = vlaneseq  ;;  %v1838_v3 = vmov 0.0   ;;  %v1839_v4 = vmov 0  }
  0xa0   : > { %v362_v1 = vunpack.c.l.s4 %v1837_v0  ;;  %1313 = vmatprep.mubr.f32.mxu0 %v1838_v3  ;;  %1618 = vset.pattern.permute.xlu0 %v1839_v4  ;;  %v306_v7 = vld [vmem:[%s2096_s13] sm:$0xff]  ;;  %v307_v8 = vld [vmem:[%s2096_s13 + $0x8] sm:$0xff]  ;;  %v1484_v13 = vld [vmem:[%s2096_s13 + $0x30] sm:$0xff]  ;;  %vm1244_vm0 = vcmask 1043456   ;;  %vm1240_vm1 = vcmask 293888   ;;  %s1482_s21 = sshll.u32 %s2092_s6, 4 }
  0xa1   : > { %v365_v6 = vshrl.u32 %v364_v2, 7  ;;  %v2121_v9 = vld [vmem:[%s2104_s5] sm:$0xff]  ;;  %v311_v10 = vunpack.c.l.bf16 %v306_v7  ;;  %v312_v11 = vunpack.c.h.bf16 %v306_v7  ;;  %v1483_v12 = vld [vmem:[%s2096_s13 + $0x28] sm:$0xff]  ;;  %v2130_v17 = vld [vmem:[%s2104_s5 + $0x10] sm:$0xff]  ;;  %v313_v18 = vunpack.c.l.bf16 %v307_v8  ;;  %s1513_s25 = sshll.u32 %s1821_s18, 8  ;;  %s302_s29 = scalar_lea.vmem [#allocation10], %s1482_s21 }
  0xa2   : > { %v363_v5 = vunpack.c.0.s8 %v362_v1  ;;  %v351_v14 = vunpack.c.l.bf16 %v2121_v9  ;;  %v352_v15 = vunpack.c.h.bf16 %v2121_v9  ;;  %v314_v19 = vunpack.c.h.bf16 %v307_v8  ;;  %v1490_v22 = vld [vmem:[%s2096_s13 + $0x50] sm:$0xff]  ;;  %v1491_v33 = vld [vmem:[%s2096_s13 + $0x58] sm:$0xff]  ;;  %v2156_v40 = vld [vmem:[%s2104_s5 + $0x20] sm:$0xff]  ;;  %s1339_s11 = sshll.u32 %s302_s29, 4  ;;  %s2343_s7 = scalar_lea.hbm %s2396_s4, %s1513_s25  ;;  %s2345_s11 = int_to_ptr.vmem [resolvable:$true] %s1339_s11 }
  0xa3   : > { %v529_v20 = vunpack.c.l.bf16 %v1483_v12  ;;  %v530_v21 = vunpack.c.h.bf16 %v1483_v12  ;;  %v2137_v24 = vsub.s32 0, %v365_v6  ;;  %v531_v25 = vunpack.c.l.bf16 %v1484_v13  ;;  %v1208_v49 = vld [vmem:[#allocation8] sm:$0xff]  ;;  %s1323_s24 = scalar_lea.sflag [#allocation4], %s2092_s6  ;;  %s1735_s18 = scalar_lea.vmem %s2345_s11, 256 }
  0xa4   : > { %v2127_v16 = vsub.s32 %v363_v5, %v365_v6  ;;  %v359_v23 = vcombine.low %v351_v14, %v352_v15  ;;  %v532_v26 = vunpack.c.h.bf16 %v1484_v13  ;;  %v2139_v27 = vcombine.low %v311_v10, %v312_v11  ;;  %1211 = vperm.xlu0 %1618, %v1208_v49   ;;  %p1736_p2 = scmp.ne.s32.totalorder %s2345_s11, %s1735_s18  ;;  %p2424_p9 = scmp.ne.s32.totalorder %s2408_s26, 0 }
  0xa5   : > { %v2141_v28 = vsub.s32 1, %v365_v6  ;;  %v570_v29 = vunpack.c.l.bf16 %v2130_v17  ;;  %v571_v30 = vunpack.c.h.bf16 %v2130_v17  ;;  %v2145_v31 = vcombine.high %v311_v10, %v312_v11  ;;  %s1840_s12 = smov [#allocation10]  }
  0xa6   : > { %v367_v32 = vrot.slane %v359_v23, %v2127_v16  ;;  %v757_v34 = vunpack.c.l.bf16 %v1490_v22  ;;  %v758_v35 = vunpack.c.h.bf16 %v1490_v22  ;;  %v333_v36 = vcombine.low %v313_v18, %v314_v19  ;;  %p1737_p13 = pnand %p1736_p2, %p2424_p9  ;;  %s1739_s14 = sshll.u32 %s1840_s12, 4  ;;  %s1740_s14 = int_to_ptr.vmem [resolvable:$false] %s1739_s14 }
  0xa7   : > { %v2149_v37 = vcombine.high %v313_v18, %v314_v19  ;;  %v549_v38 = vcombine.low %v529_v20, %v530_v21  ;;  %v578_v39 = vcombine.low %v570_v29, %v571_v30  ;;  %v550_v43 = vcombine.high %v529_v20, %v530_v21  ;;  %v1497_v19 = vld [vmem:[%s2096_s13 + $0x78] sm:$0xff]  ;;  %s1741_s23 = scalar_lea.vmem %s1740_s14, 512  ;;  %p1742_p12 = scmp.lt.s32.totalorder %s2345_s11, %s1740_s14 }
  0xa8   : > { %v375_v41 = vcombine.high %v367_v32, %v367_v32  ;;  %v383_v42 = vrot.slane %v367_v32, %v2127_v16  ;;  %v551_v44 = vcombine.low %v531_v25, %v532_v26  ;;  %v2159_v45 = vcombine.high %v531_v25, %v532_v26  ;;  %p1738_p4 = pneg %p1737_p13  ;;  %p1743_p5 = scmp.lt.s32.totalorder %s1741_s23, %s1735_s18 }
  0xa9   : > { %v586_v46 = vrot.slane %v578_v39, %v2127_v16  ;;  %v759_v47 = vunpack.c.l.bf16 %v1491_v33  ;;  %v760_v48 = vunpack.c.h.bf16 %v1491_v33  ;;  %v2163_v52 = vcombine.low %v757_v34, %v758_v35 }
  0xaa   : > { %v397_v50 = vrot.slane %v375_v41, %v2127_v16  ;;  %v405_v51 = vcombine.high %v383_v42, %v383_v42  ;;  %v798_v53 = vunpack.c.l.bf16 %v2156_v40  ;;  %v427_v54 = vrot.slane %v383_v42, %v2137_v24  ;;  %v1498_v41 = vld [vmem:[%s2096_s13 + $0x80] sm:$0xff]  ;;  %p1744_p11 = por %p1743_p5, %p1742_p12 }
  0xab   : > { %v594_v55 = vcombine.high %v586_v46, %v586_v46  ;;  %v602_v56 = vrot.slane %v586_v46, %v2127_v16  ;;  %v799_v57 = vunpack.c.h.bf16 %v2156_v40  ;;  %v431_v59 = vrot.slane %v383_v42, %v2141_v28 }
  0xac   : > { %v407_v58 = vcombine.high %v397_v50, %v397_v50  ;;  %v435_v60 = vrot.slane %v397_v50, %v2137_v24  ;;  %v439_v61 = vrot.slane %v397_v50, %v2141_v28  ;;  %v443_v62 = vrot.slane %v405_v51, %v2137_v24  ;;  %p1745_p1 = pnand %p1744_p11, %p1738_p4 }
  0xad   : > { %v447_v63 = vrot.slane %v405_v51, %v2141_v28  ;;  %v616_v0 = vrot.slane %v594_v55, %v2127_v16  ;;  %v624_v1 = vcombine.high %v602_v56, %v602_v56  ;;  %v646_v4 = vrot.slane %v602_v56, %v2137_v24 }
  0xae   : > { %v451_v2 = vrot.slane %v407_v58, %v2137_v24  ;;  %v455_v3 = vrot.slane %v407_v58, %v2141_v28  ;;  %v2178_v5 = vcombine.high %v757_v34, %v758_v35  ;;  %v650_v7 = vrot.slane %v602_v56, %v2141_v28 }
  0xaf   : > { %v626_v6 = vcombine.high %v616_v0, %v616_v0  ;;  %v2181_v8 = vcombine.low %v759_v47, %v760_v48  ;;  %v806_v10 = vcombine.low %v798_v53, %v799_v57  ;;  %v496_v11 = vcombine.low %v427_v54, %v431_v59 }
  0xb0   : > { %v497_v12 = vcombine.low %v435_v60, %v439_v61  ;;  %v654_v13 = vrot.slane %v616_v0, %v2137_v24  ;;  %v658_v18 = vrot.slane %v616_v0, %v2141_v28  ;;  %v498_v20 = vcombine.low %v443_v62, %v447_v63 }
  0xb1   : > { %v662_v21 = vrot.slane %v624_v1, %v2137_v24  ;;  %v666_v22 = vrot.slane %v624_v1, %v2141_v28  ;;  %v670_v23 = vrot.slane %v626_v6, %v2137_v24  ;;  %v499_v25 = vcombine.low %v451_v2, %v455_v3 }
  0xb2   : > { %v674_v26 = vrot.slane %v626_v6, %v2141_v28  ;;  %v715_v32 = vcombine.low %v646_v4, %v650_v7  ;;  %v716_v33 = vcombine.low %v654_v13, %v658_v18  ;;  %v780_v35 = vcombine.high %v759_v47, %v760_v48 }
  0xb3   : > { %v717_v34 = vcombine.low %v662_v21, %v666_v22  ;;  %v814_v39 = vrot.slane %v806_v10, %v2127_v16  ;;  %v985_v42 = vunpack.c.l.bf16 %v1497_v19  ;;  %v514_v46 = vmul.f32 %v496_v11, %v2139_v27  ;;  %v2222_v22 = vld [vmem:[%s2096_s13 + $0x18] sm:$0xff] }
  0xb4   : > { %v718_v49 = vcombine.low %v670_v23, %v674_v26  ;;  %v733_v50 = vmul.f32 %v715_v32, %v549_v38  ;;  %v986_v51 = vunpack.c.h.bf16 %v1497_v19  ;;  %v515_v54 = vmul.f32 %v497_v12, %v2145_v31  ;;  %v2203_v38 = vld [vmem:[%s2104_s5 + $0x30] sm:$0xff] }
  0xb5   : > { %v516_v55 = vmul.f32 %v498_v20, %v333_v36  ;;  %v822_v56 = vcombine.high %v814_v39, %v814_v39  ;;  %v830_v58 = vrot.slane %v814_v39, %v2127_v16  ;;  %v517_v59 = vmul.f32 %v499_v25, %v2149_v37 }
  0xb6   : > { %v734_v60 = vmul.f32 %v716_v33, %v550_v43  ;;  %v987_v47 = vunpack.c.l.bf16 %v1498_v41  ;;  %v988_v48 = vunpack.c.h.bf16 %v1498_v41  ;;  %v735_v61 = vmul.f32 %v717_v34, %v551_v44 }
  0xb7   : > { %v844_v62 = vrot.slane %v822_v56, %v2127_v16  ;;  %v852_v27 = vcombine.high %v830_v58, %v830_v58  ;;  %v874_v63 = vrot.slane %v830_v58, %v2137_v24  ;;  %v736_v31 = vmul.f32 %v718_v49, %v2159_v45  ;;  %v308_v45 = vld [vmem:[%s2096_s13 + $0x10] sm:$0xff] }
  0xb8   : > { %v742_v36 = vadd.f32 %v733_v50, %v514_v46  ;;  %v878_v0 = vrot.slane %v830_v58, %v2141_v28  ;;  %v1005_v1 = vcombine.low %v985_v42, %v986_v51  ;;  %v1026_v6 = vunpack.c.l.bf16 %v2203_v38 }
  0xb9   : > { %v854_v2 = vcombine.high %v844_v62, %v844_v62  ;;  %v882_v37 = vrot.slane %v844_v62, %v2137_v24  ;;  %v886_v43 = vrot.slane %v844_v62, %v2141_v28  ;;  %v890_v44 = vrot.slane %v852_v27, %v2137_v24 }
  0xba   : > { %v894_v3 = vrot.slane %v852_v27, %v2141_v28  ;;  %v943_v4 = vcombine.low %v874_v63, %v878_v0  ;;  %v1027_v7 = vunpack.c.h.bf16 %v2203_v38  ;;  %v743_v10 = vadd.f32 %v734_v60, %v515_v54 }
  0xbb   : > { %v898_v11 = vrot.slane %v854_v2, %v2137_v24  ;;  %v902_v12 = vrot.slane %v854_v2, %v2141_v28  ;;  %v944_v13 = vcombine.low %v882_v37, %v886_v43  ;;  %v1006_v20 = vcombine.high %v985_v42, %v986_v51 }
  0xbc   : > { %v945_v18 = vcombine.low %v890_v44, %v894_v3  ;;  %v961_v19 = vmul.f32 %v943_v4, %v2163_v52  ;;  %v1034_v21 = vcombine.low %v1026_v6, %v1027_v7  ;;  %v315_v26 = vunpack.c.l.bf16 %v308_v45 }
  0xbd   : > { %v946_v23 = vcombine.low %v898_v11, %v902_v12  ;;  %v962_v25 = vmul.f32 %v944_v13, %v2178_v5  ;;  %v316_v32 = vunpack.c.h.bf16 %v308_v45  ;;  %v744_v33 = vadd.f32 %v735_v61, %v516_v55  ;;  %v1485_v5 = vld [vmem:[%s2096_s13 + $0x38] sm:$0xff] }
  0xbe   : > { %v745_v34 = vadd.f32 %v736_v31, %v517_v59  ;;  %v1007_v39 = vcombine.low %v987_v47, %v988_v48  ;;  %v1042_v41 = vrot.slane %v1034_v21, %v2127_v16  ;;  %v963_v52 = vmul.f32 %v945_v18, %v2181_v8 }
  0xbf   : > { %v964_v42 = vmul.f32 %v946_v23, %v780_v35  ;;  %v1008_v46 = vcombine.high %v987_v47, %v988_v48  ;;  %v317_v49 = vunpack.c.l.bf16 %v2222_v22  ;;  %v970_v50 = vadd.f32 %v961_v19, %v742_v36 }
  0xc0   : > { %v1050_v51 = vcombine.high %v1042_v41, %v1042_v41  ;;  %v1058_v54 = vrot.slane %v1042_v41, %v2127_v16  ;;  %v318_v56 = vunpack.c.h.bf16 %v2222_v22  ;;  %v971_v58 = vadd.f32 %v962_v25, %v743_v10  ;;  %v1486_v41 = vld [vmem:[%s2096_s13 + $0x40] sm:$0xff] }
  0xc1   : > { %v2231_v60 = vcombine.low %v315_v26, %v316_v32  ;;  %v2233_v55 = vcombine.high %v315_v26, %v316_v32  ;;  %v360_v8 = vcombine.high %v351_v14, %v352_v15  ;;  %v972_v61 = vadd.f32 %v963_v52, %v744_v33 }
  0xc2   : > { %v1072_v35 = vrot.slane %v1050_v51, %v2127_v16  ;;  %v1080_v59 = vcombine.high %v1058_v54, %v1058_v54  ;;  %v1102_v47 = vrot.slane %v1058_v54, %v2137_v24  ;;  %v1106_v48 = vrot.slane %v1058_v54, %v2141_v28 }
  0xc3   : > { %v973_v62 = vadd.f32 %v964_v42, %v745_v34  ;;  %v374_v27 = vrot.slane %v360_v8, %v2127_v16  ;;  %v533_v63 = vunpack.c.l.bf16 %v1485_v5  ;;  %v534_v4 = vunpack.c.h.bf16 %v1485_v5 }
  0xc4   : > { %v1082_v31 = vcombine.high %v1072_v35, %v1072_v35  ;;  %v1110_v36 = vrot.slane %v1072_v35, %v2137_v24  ;;  %v1114_v0 = vrot.slane %v1072_v35, %v2141_v28  ;;  %v1118_v9 = vrot.slane %v1080_v59, %v2137_v24 }
  0xc5   : > { %v1122_v14 = vrot.slane %v1080_v59, %v2141_v28  ;;  %v1171_v15 = vcombine.low %v1102_v47, %v1106_v48  ;;  %v376_v2 = vcombine.high %v374_v27, %v374_v27  ;;  %v390_v37 = vrot.slane %v374_v27, %v2127_v16  ;;  %v1492_v59 = vld [vmem:[%s2096_s13 + $0x60] sm:$0xff] }
  0xc6   : > { %v1126_v43 = vrot.slane %v1082_v31, %v2137_v24  ;;  %v1130_v44 = vrot.slane %v1082_v31, %v2141_v28  ;;  %v1172_v3 = vcombine.low %v1110_v36, %v1114_v0  ;;  %v337_v5 = vcombine.low %v317_v49, %v318_v56 }
  0xc7   : > { %v1173_v45 = vcombine.low %v1118_v9, %v1122_v14  ;;  %v1189_v10 = vmul.f32 %v1171_v15, %v1005_v1  ;;  %v404_v11 = vrot.slane %v376_v2, %v2127_v16  ;;  %v406_v12 = vcombine.high %v390_v37, %v390_v37  ;;  %v1493_v9 = vld [vmem:[%s2096_s13 + $0x68] sm:$0xff] }
  0xc8   : > { %v1174_v13 = vcombine.low %v1126_v43, %v1130_v44  ;;  %v1190_v18 = vmul.f32 %v1172_v3, %v1006_v20  ;;  %v459_v19 = vrot.slane %v390_v37, %v2137_v24  ;;  %v463_v21 = vrot.slane %v390_v37, %v2141_v28  ;;  %v1499_v44 = vld [vmem:[%s2096_s13 + $0x88] sm:$0xff] }
  0xc9   : > { %v1191_v22 = vmul.f32 %v1173_v45, %v1007_v39  ;;  %v1198_v23 = vadd.f32 %v1189_v10, %v970_v50  ;;  %v408_v25 = vcombine.high %v404_v11, %v404_v11  ;;  %v467_v26 = vrot.slane %v404_v11, %v2137_v24 }
  0xca   : > { %v1192_v32 = vmul.f32 %v1174_v13, %v1008_v46  ;;  %v1199_v33 = vadd.f32 %v1190_v18, %v971_v58  ;;  %v471_v34 = vrot.slane %v404_v11, %v2141_v28  ;;  %v475_v1 = vrot.slane %v406_v12, %v2137_v24 }
  0xcb   : > { %v1200_v52 = vadd.f32 %v1191_v22, %v972_v61  ;;  %v479_v20 = vrot.slane %v406_v12, %v2141_v28  ;;  %v483_v42 = vrot.slane %v408_v25, %v2137_v24  ;;  %v487_v51 = vrot.slane %v408_v25, %v2141_v28 }
  0xcc   : > { %v1201_v39 = vadd.f32 %v1192_v32, %v973_v62  ;;  %v1224_v50 = vcombine.high %v1198_v23, %v1199_v33  ;;  %v1223_v54 = vcombine.low %v1198_v23, %v1199_v33  ;;  %v338_v46 = vcombine.high %v317_v49, %v318_v56  ;;  %v1500_v23 = vld [vmem:[%s2096_s13 + $0x90] sm:$0xff] }
  0xcd   : > { %v500_v58 = vcombine.low %v459_v19, %v463_v21  ;;  %v535_v8 = vunpack.c.l.bf16 %v1486_v41  ;;  %v536_v35 = vunpack.c.h.bf16 %v1486_v41  ;;  %v501_v61 = vcombine.low %v467_v26, %v471_v34 }
  0xce   : > { %v1226_v47 = vcombine.high %v1200_v52, %v1201_v39  ;;  %v1225_v48 = vcombine.low %v1200_v52, %v1201_v39  ;;  %v553_v27 = vcombine.low %v533_v63, %v534_v4  ;;  %v502_v31 = vcombine.low %v475_v1, %v479_v20 }
  0xcf   : > { %v503_v36 = vcombine.low %v483_v42, %v487_v51  ;;  %v554_v0 = vcombine.high %v533_v63, %v534_v4  ;;  %v579_v62 = vcombine.high %v570_v29, %v571_v30  ;;  %v761_v56 = vunpack.c.l.bf16 %v1492_v59 }
  0xd0   : > { %v1514_v14 = vpack.c.bf16 %v1226_v47, %v1224_v50  ;;  %v1516_v49 = vpack.c.bf16 %v1225_v48, %v1223_v54  ;;  %v762_v15 = vunpack.c.h.bf16 %v1492_v59  ;;  %v2267_v2 = vmul.f32 %v500_v58, %v2231_v60 }
  0xd1   : > { %v555_v37 = vcombine.low %v535_v8, %v536_v35  ;;  %v593_v43 = vrot.slane %v579_v62, %v2127_v16  ;;  %v807_v63 = vcombine.high %v798_v53, %v799_v57  ;;  %v519_v17 = vmul.f32 %v501_v61, %v2233_v55 }
  0xd2   : > { %1515 = vmatprep.subr.bf16.mxu0 %v1514_v14  ;;  %v556_v29 = vcombine.high %v535_v8, %v536_v35  ;;  %v763_v30 = vunpack.c.l.bf16 %v1493_v9  ;;  %v764_v3 = vunpack.c.h.bf16 %v1493_v9  ;;  %v520_v4 = vmul.f32 %v502_v31, %v337_v5 }
  0xd3   : > { %1517 = vmatpush1.bf16.msra.mxu0 %v1516_v49  ;;  %v521_v60 = vmul.f32 %v503_v36, %v338_v46  ;;  %v595_v45 = vcombine.high %v593_v43, %v593_v43  ;;  %v609_v10 = vrot.slane %v593_v43, %v2127_v16  ;;  %v781_v11 = vcombine.low %v761_v56, %v762_v15 }
  0xd4   : > { %v782_v12 = vcombine.high %v761_v56, %v762_v15  ;;  %v821_v13 = vrot.slane %v807_v63, %v2127_v16  ;;  %v989_v40 = vunpack.c.l.bf16 %v1499_v44  ;;  %v783_v19 = vcombine.low %v763_v30, %v764_v3 }
  0xd5   : > { %v623_v53 = vrot.slane %v595_v45, %v2127_v16  ;;  %v625_v57 = vcombine.high %v609_v10, %v609_v10  ;;  %v678_v55 = vrot.slane %v609_v10, %v2137_v24  ;;  %v682_v18 = vrot.slane %v609_v10, %v2141_v28 }
  0xd6   : > { %v823_v21 = vcombine.high %v821_v13, %v821_v13  ;;  %v837_v22 = vrot.slane %v821_v13, %v2127_v16  ;;  %v990_v25 = vunpack.c.h.bf16 %v1499_v44  ;;  %v991_v50 = vunpack.c.l.bf16 %v1500_v23  ;;  %v350_v44 = vld [vmem:[%s2104_s5 + $0x8] sm:$0x11] }
  0xd7   : > { %v627_v26 = vcombine.high %v623_v53, %v623_v53  ;;  %v686_v32 = vrot.slane %v623_v53, %v2137_v24  ;;  %v690_v33 = vrot.slane %v623_v53, %v2141_v28  ;;  %v694_v34 = vrot.slane %v625_v57, %v2137_v24 }
  0xd8   : > { %v698_v1 = vrot.slane %v625_v57, %v2141_v28  ;;  %v719_v41 = vcombine.low %v678_v55, %v682_v18  ;;  %v851_v52 = vrot.slane %v823_v21, %v2127_v16  ;;  %v853_v20 = vcombine.high %v837_v22, %v837_v22  ;;  %v310_v57 = vld [vmem:[%s2096_s13 + $0x20] sm:$0x33]  ;;  %v1489_v21 = vld [vmem:[%s2104_s5 + $0x18] sm:$0x11] }
  0xd9   : > { %v702_v42 = vrot.slane %v627_v26, %v2137_v24  ;;  %v706_v51 = vrot.slane %v627_v26, %v2141_v28  ;;  %v720_v39 = vcombine.low %v686_v32, %v690_v33  ;;  %v906_v46 = vrot.slane %v837_v22, %v2137_v24 }
  0xda   : > { %v721_v54 = vcombine.low %v694_v34, %v698_v1  ;;  %v855_v5 = vcombine.high %v851_v52, %v851_v52  ;;  %v910_v58 = vrot.slane %v837_v22, %v2141_v28  ;;  %v914_v35 = vrot.slane %v851_v52, %v2137_v24 }
  0xdb   : > { %v722_v8 = vcombine.low %v702_v42, %v706_v51  ;;  %v918_v59 = vrot.slane %v851_v52, %v2141_v28  ;;  %v992_v47 = vunpack.c.h.bf16 %v1500_v23  ;;  %v737_v48 = vmul.f32 %v719_v41, %v553_v27 }
  0xdc   : > { %v738_v61 = vmul.f32 %v720_v39, %v554_v0  ;;  %v922_v31 = vrot.slane %v853_v20, %v2137_v24  ;;  %v926_v36 = vrot.slane %v853_v20, %v2141_v28  ;;  %v739_v62 = vmul.f32 %v721_v54, %v555_v37  ;;  %v1487_v39 = vld [vmem:[%s2096_s13 + $0x48] sm:$0x33] }
  0xdd   : > { %v740_v9 = vmul.f32 %v722_v8, %v556_v29  ;;  %v930_v14 = vrot.slane %v855_v5, %v2137_v24  ;;  %v934_v49 = vrot.slane %v855_v5, %v2141_v28  ;;  %v784_v56 = vcombine.high %v763_v30, %v764_v3 }
  0xde   : > { %v947_v15 = vcombine.low %v906_v46, %v910_v58  ;;  %v948_v43 = vcombine.low %v914_v35, %v918_v59  ;;  %v949_v63 = vcombine.low %v922_v31, %v926_v36  ;;  %v1009_v27 = vcombine.low %v989_v40, %v990_v25 }
  0xdf   : > { %v950_v45 = vcombine.low %v930_v14, %v934_v49  ;;  %v1010_v0 = vcombine.high %v989_v40, %v990_v25  ;;  %v1035_v37 = vcombine.high %v1026_v6, %v1027_v7  ;;  %v746_v29 = vadd.f32 %v737_v48, %v2267_v2 }
  0xe0   : > { %v747_v10 = vadd.f32 %v738_v61, %v519_v17  ;;  %v965_v13 = vmul.f32 %v947_v15, %v781_v11  ;;  %v1011_v53 = vcombine.low %v991_v50, %v992_v47  ;;  %v748_v30 = vadd.f32 %v739_v62, %v520_v4 }
  0xe1   : > { %v749_v3 = vadd.f32 %v740_v9, %v521_v60  ;;  %v1049_v55 = vrot.slane %v1035_v37, %v2127_v16  ;;  %v353_v18 = vunpack.c.l.bf16 %v350_v44  ;;  %v966_v22 = vmul.f32 %v948_v43, %v782_v12 }
  0xe2   : > { %v967_v23 = vmul.f32 %v949_v63, %v783_v19  ;;  %v1012_v40 = vcombine.high %v991_v50, %v992_v47  ;;  %v354_v25 = vunpack.c.h.bf16 %v350_v44  ;;  %v968_v26 = vmul.f32 %v950_v45, %v784_v56  ;;  %v1496_v47 = vld [vmem:[%s2104_s5 + $0x28] sm:$0x11] }
  0xe3   : > { %v1051_v32 = vcombine.high %v1049_v55, %v1049_v55  ;;  %v1065_v38 = vrot.slane %v1049_v55, %v2127_v16  ;;  %v319_v6 = vunpack.c.l.bf16 %v310_v57  ;;  %v974_v7 = vadd.f32 %v965_v13, %v746_v29  ;;  %v1494_v55 = vld [vmem:[%s2096_s13 + $0x70] sm:$0x33] }
  0xe4   : > { %v320_v2 = vunpack.c.h.bf16 %v310_v57  ;;  %v409_v17 = vcombine.low %v353_v18, %v354_v25  ;;  %v572_v11 = vunpack.c.l.bf16 %v1489_v21  ;;  %v975_v19 = vadd.f32 %v966_v22, %v747_v10 }
  0xe5   : > { %v1079_v4 = vrot.slane %v1051_v32, %v2127_v16  ;;  %v1081_v60 = vcombine.high %v1065_v38, %v1065_v38  ;;  %v1134_v33 = vrot.slane %v1065_v38, %v2137_v24  ;;  %v1138_v12 = vrot.slane %v1065_v38, %v2141_v28 }
  0xe6   : > { %v976_v34 = vadd.f32 %v967_v23, %v748_v30  ;;  %v416_v1 = vrot.slane %v409_v17, %v2127_v16  ;;  %v573_v41 = vunpack.c.h.bf16 %v1489_v21  ;;  %v977_v58 = vadd.f32 %v968_v26, %v749_v3 }
  0xe7   : > { %v1083_v52 = vcombine.high %v1079_v4, %v1079_v4  ;;  %v1142_v20 = vrot.slane %v1079_v4, %v2137_v24  ;;  %v1146_v42 = vrot.slane %v1079_v4, %v2141_v28  ;;  %v1150_v51 = vrot.slane %v1081_v60, %v2137_v24 }
  0xe8   : > { %v1154_v50 = vrot.slane %v1081_v60, %v2141_v28  ;;  %v1175_v54 = vcombine.low %v1134_v33, %v1138_v12  ;;  %v423_v5 = vrot.slane %v416_v1, %v2127_v16  ;;  %v628_v46 = vcombine.low %v572_v11, %v573_v41 }
  0xe9   : > { %v1158_v8 = vrot.slane %v1083_v52, %v2137_v24  ;;  %v1162_v35 = vrot.slane %v1083_v52, %v2141_v28  ;;  %v1176_v59 = vcombine.low %v1142_v20, %v1146_v42  ;;  %v537_v31 = vunpack.c.l.bf16 %v1487_v39 }
  0xea   : > { %v1177_v48 = vcombine.low %v1150_v51, %v1154_v50  ;;  %v1193_v61 = vmul.f32 %v1175_v54, %v1009_v27  ;;  %v538_v36 = vunpack.c.h.bf16 %v1487_v39  ;;  %v491_v14 = vrot.slane %v423_v5, %v2137_v24  ;;  %v1503_v27 = vld [vmem:[%s2104_s5 + $0x38] sm:$0x11] }
  0xeb   : > { %v1178_v62 = vcombine.low %v1158_v8, %v1162_v35  ;;  %v1194_v9 = vmul.f32 %v1176_v59, %v1010_v0  ;;  %v635_v49 = vrot.slane %v628_v46, %v2127_v16  ;;  %v495_v43 = vrot.slane %v423_v5, %v2141_v28 }
  0xec   : > { %v1195_v56 = vmul.f32 %v1177_v48, %v1011_v53  ;;  %v1202_v15 = vadd.f32 %v1193_v61, %v974_v7  ;;  %v800_v63 = vunpack.c.l.bf16 %v1496_v47  ;;  %v801_v29 = vunpack.c.h.bf16 %v1496_v47  ;;  %v1207_v48 = vld [vmem:[#allocation7] sm:$0xff] }
  0xed   : > { %v1196_v44 = vmul.f32 %v1178_v62, %v1012_v40  ;;  %v1203_v45 = vadd.f32 %v1194_v9, %v975_v19  ;;  %v642_v37 = vrot.slane %v635_v49, %v2127_v16  ;;  %v339_v13 = vcombine.low %v319_v6, %v320_v2  ;;  %v1501_v2 = vld [vmem:[%s2096_s13 + $0x98] sm:$0x33] }
  0xee   : > { %v1204_v10 = vadd.f32 %v1195_v56, %v976_v34  ;;  %v557_v57 = vcombine.low %v537_v31, %v538_v36  ;;  %v504_v18 = vcombine.low %v491_v14, %v495_v43  ;;  %v856_v22 = vcombine.low %v800_v63, %v801_v29 }
  0xef   : > { %v1205_v0 = vadd.f32 %v1196_v44, %v977_v58  ;;  %v1228_v30 = vcombine.high %v1202_v15, %v1203_v45  ;;  %v1227_v3 = vcombine.low %v1202_v15, %v1203_v45  ;;  %v710_v53 = vrot.slane %v642_v37, %v2137_v24 }
  0xf0   : > { %v714_v21 = vrot.slane %v642_v37, %v2141_v28  ;;  %v1028_v23 = vunpack.c.l.bf16 %v1503_v27  ;;  %v1029_v26 = vunpack.c.h.bf16 %v1503_v27  ;;  %v765_v38 = vunpack.c.l.bf16 %v1494_v55 }
  0xf1   : > { %v1230_v40 = vcombine.high %v1204_v10, %v1205_v0  ;;  %v1229_v25 = vcombine.low %v1204_v10, %v1205_v0  ;;  %v766_v7 = vunpack.c.h.bf16 %v1494_v55  ;;  %v863_v6 = vrot.slane %v856_v22, %v2127_v16 }
  0xf2   : > { %v723_v32 = vcombine.low %v710_v53, %v714_v21  ;;  %v1084_v4 = vcombine.low %v1028_v23, %v1029_v26  ;;  %v522_v60 = vmul.f32 %v504_v18, %v339_v13  ;;  %v993_v19 = vunpack.c.l.bf16 %v1501_v2 }
  0xf3   : > { %v1518_v17 = vpack.c.bf16 %v1230_v40, %v1228_v30  ;;  %v1520_v11 = vpack.c.bf16 %v1229_v25, %v1227_v3  ;;  %v870_v12 = vrot.slane %v863_v6, %v2127_v16  ;;  %v994_v34 = vunpack.c.h.bf16 %v1501_v2 }
  0xf4   : > { %v741_v33 = vmul.f32 %v723_v32, %v557_v57  ;;  %v1091_v1 = vrot.slane %v1084_v4, %v2127_v16  ;;  %v785_v41 = vcombine.low %v765_v38, %v766_v7 }
  0xf5   : > { %1519 = vmatprep.subr.bf16.mxu0 %v1518_v17  ;;  %v938_v52 = vrot.slane %v870_v12, %v2137_v24  ;;  %v942_v20 = vrot.slane %v870_v12, %v2141_v28  ;;  %v1013_v50 = vcombine.low %v993_v19, %v994_v34 }
  0xf6   : > { %1521 = vmatpush1.bf16.msra.mxu0 %v1520_v11  ;;  %v1098_v42 = vrot.slane %v1091_v1, %v2127_v16  ;;  %v750_v51 = vadd.f32 %v741_v33, %v522_v60 }
  0xf7   : > { %v951_v39 = vcombine.low %v938_v52, %v942_v20 }
  0xf8   : > { %v1166_v54 = vrot.slane %v1098_v42, %v2137_v24  ;;  %v1170_v5 = vrot.slane %v1098_v42, %v2141_v28 }
  0xf9   : > { %v969_v46 = vmul.f32 %v951_v39, %v785_v41 }
  0xfa   : > { %v1179_v58 = vcombine.low %v1166_v54, %v1170_v5 }
  0xfb   : > { %v978_v8 = vadd.f32 %v969_v46, %v750_v51 }
  0xfc   : > { %v1197_v35 = vmul.f32 %v1179_v58, %v1013_v50 }
  0xfe   : > { %v1206_v59 = vadd.f32 %v1197_v35, %v978_v8 }
 0x100   : > { %v1231_v47 = vcombine.high %v1206_v59, %v1206_v59 }
 0x102   : > { %1504 = vmatprep.subr.msk.mxu0 %vm1244_vm0, %v1231_v47 }
 0x103   : > { %1505 = vmatpush1.msk.msra.mxu0 %vm1244_vm0, %v1206_v59 }
 0x104   : > { %1506 = vmatmul.mubr.msk.f32.vlgmr.msra.gmra.mrb[0].mxu0 %vm1240_vm1, %v1207_v48 }
 0x123   : > { %v1212_v16 = vpop.permute.xlu0 %1211 }
 0x1d7   : > { %v1315_v24 = vpop.f32.mrb[0].mxu0 }
 0x1d8   : > { %v1316_v28 = vadd.f32 %v1315_v24, %v1212_v16  ;;  %v1317_v61 = vpop.f32.mrb[1].mxu0 }
 0x1d9   : > { %v1318_v31 = vadd.f32 %v1317_v61, %v1212_v16 }
 0x1da   : > { %1320 = vst [vmem:[%s302_s29] sm:$0xff] %v1316_v28 }
 0x1db   : > { %1321 = vst [vmem:[%s302_s29 + $0x8] sm:$0xff] %v1318_v31 }
 0x1dc   : > { %1748 = shalt.err (!%p1745_p1)
}
 0x1dd   : > { %s1749_s22 = scalar_lea.hbm %s2343_s7, 256  ;;  %s1753_s9 = scalar_lea.hbm %s2396_s4, 512 }
 0x1de   : > { %p1750_p8 = scmp.ne.s32.totalorder %s2343_s7, %s1749_s22  ;;  %p1754_p0 = scmp.lt.u32.totalorder %s2343_s7, %s2396_s4 }
 0x1df   : > { %p1755_p6 = scmp.lt.u32.totalorder %s1753_s9, %s1749_s22  ;;  %p1757_p2 = scmp.lt.u32.totalorder %s1749_s22, %s2343_s7 }
 0x1e0   : > { %p1751_p10 = pnand %p1750_p8, %p2424_p9 }
 0x1e1   : > { %p1756_p3 = por %p1755_p6, %p1754_p0 }
 0x1e2   : > { %p1752_p7 = pneg %p1751_p10 }
 0x1e3   : > { %p1758_p13 = por %p1757_p2, %p1756_p3 }
 0x1e5   : > { %p1759_p4 = pnand %p1758_p13, %p1752_p7 }
 0x1e7   : > { %1762 = shalt.err (!%p1759_p4)
}
 0x1e8   : > { %1537 = dma.vmem_to_hbm [thread:$0]  (%p2424_p9), %s2345_s11, 256, %s2343_s7, %s1323_s24  }
 0x1e9 PF: > { %s1351_s3 = sand.u32 1, %s1809_s15   ;;  %p2425_p12 = scmp.ne.s32.totalorder %s2409_s27, 0 }
 0x1ea   : > { %p2426_p5 = scmp.ge.s32.totalorder %s1829_s20, 2  ;;  %s1352_s28 = scalar_lea.sflag [#allocation4], %s1351_s3 }
 0x1ec   : > { %p1554_p11 = pnand %p2426_p5, %p2425_p12 }
 0x1ee   : > { %1804 = dma.done.wait (!%p1554_p11), %s1352_s28, 256  }
 0x1ef   : > { %1806 = vsyncadd (!%p1554_p11), %s1352_s28, 4294967040  ;;  %s24_s20 = sadd.s32 1, %s1829_s20   ;;  %s2427_s26 = sld [smem:[#allocation16_spill]] }
 0x1f0   : > { %p21_p1 = scmp.ge.s32.totalorder %s24_s20, 4   ;;  %s2428_s15 = smov %s1813_s16 }
 0x1f1   : > { %s2429_s16 = smov %s1817_s17  ;;  %s2430_s17 = smov %s2017_s30 }
 0x1f2   : > { %s2431_s18 = smov %s1825_s19  ;;  %23 = sbr.rel (!%p21_p1) target bundleno = 13 (0xd), region = 108 }
 0x1f5   : > { %s2432_s19 = smov %s2427_s26 }
 0x1f9   :  { %1357 = vsyncpa [#allocation3], 1 }
 0x1fa   :  { %1359 = vsyncpa [#allocation3 + $0x1], 1 }
 0x1fb   :  { %1360 = vsyncpa [#allocation6], 1 }
 0x1fc   :  { %1362 = vsyncpa [#allocation6 + $0x1], 1 }
 0x1fd   :  { %1363 = vsyncpa [#allocation9], 1 }
 0x1fe   :  { %1364 = vsyncpa [#allocation4], 1 }
 0x1ff   :  { %1366 = vsyncpa [#allocation4 + $0x1], 1 }

</bundles_post_ra>
